<compile_context>
chip_gen: v6e
topology: v6e:2x2x1
jax: 0.10.0
libtpu: 0.0.40
codegen_flags: <defaults>
</compile_context>

<pallas_src>
import math

import jax
import jax.numpy as jnp
from jax.experimental import pallas as pl
from jax.experimental.pallas import tpu as pltpu


def _round_up(a, b):
    return (a + b - 1) // b * b


def _vmem_budget():
    """Return (tile_budget_bytes, vmem_limit_bytes), generation-aware."""
    cap = None
    try:
        info = pltpu.get_tpu_info()
        for name in ("vmem_capacity_bytes", "vmem_bytes", "vmem_size_bytes"):
            cap = getattr(info, name, None)
            if cap:
                break
    except Exception:
        cap = None
    if not cap:
        cap = 64 * 1024 * 1024          # conservative fallback: assume v7x (64 MiB/TC)
    cap = int(cap)
    if cap >= 100 * 1024 * 1024:        # v5e / v6e: 128 MiB VMEM
        return 48 * 1024 * 1024, 96 * 1024 * 1024
    return 16 * 1024 * 1024, 48 * 1024 * 1024   # v7x: 64 MiB VMEM


# ---------------------------------------------------------------------------
# WordAttention
# ---------------------------------------------------------------------------
def _word_attention_kernel(x_ref, mask_ref, wp_ref, bp_ref, ws_ref, bs_ref, out_ref):
    # x_ref:    (S_TILE, NT, D)  token features (native dtype)
    # mask_ref: (S_TILE, NT)     0/1 token mask, lane-dense
    # wp_ref:   (D, P) bf16      bp_ref: (1, P) f32
    # ws_ref:   (1, P) f32       bs_ref: (1, 1) f32
    # out_ref:  (S_TILE, D)      lane-dense 2-D output block
    s_tile, nt, d = x_ref.shape
    p = wp_ref.shape[1]

    x = x_ref[...]                                     # (S, NT, D), native dtype
    x2 = x.reshape(s_tile * nt, d)

    # att_proj + tanh: one bf16 MXU matmul over all S_TILE*NT token rows,
    # f32 accumulation, f32 epilogue (v5e VPU/EUP have no bf16).
    proj = jnp.dot(x2.astype(jnp.bfloat16), wp_ref[...],
                   preferred_element_type=jnp.float32) + bp_ref[...]
    proj = jnp.tanh(proj)                              # (S*NT, P) f32
    proj3 = proj.reshape(s_tile, nt, p)

    # att_scorer: VPU multiply + XLU lane reduction (avoid an N=1 MXU matmul);
    # one relayout down to a lane-dense (S, NT) score matrix.
    scores = jnp.sum(proj3 * ws_ref[...], axis=-1) + bs_ref[...]     # (S, NT)

    # masked softmax over the token (lane) axis, robust to fully-masked rows.
    m = mask_ref[...]                                  # (S, NT) f32
    neg_inf = jnp.float32(-jnp.inf)
    masked = jnp.where(m > 0, scores, neg_inf)
    mx = jnp.max(masked, axis=-1, keepdims=True)       # (S, 1)
    mx_safe = jnp.where(jnp.isfinite(mx), mx, jnp.float32(0.0))
    e = jnp.where(m > 0, jnp.exp(masked - mx_safe), jnp.float32(0.0))
    denom = jnp.sum(e, axis=-1, keepdims=True)         # (S, 1)
    inv = pl.reciprocal(jnp.maximum(denom, jnp.float32(1e-30)), approx=True)
    att = e * inv                                      # (S, NT); fully-masked row -> zeros

    # Weighted sum over tokens (the bmm in the reference), chunked over NT so
    # the f32 product temporary never exceeds a (S_TILE, chunk, D) slab.
    chunk = min(nt, 128)
    acc = jnp.zeros((s_tile, d), jnp.float32)
    for c0 in range(0, nt, chunk):
        c1 = min(nt, c0 + chunk)
        xc = x[:, c0:c1, :].astype(jnp.float32)        # (S, chunk, D)
        ac = att[:, c0:c1]                             # (S, chunk)
        acc = acc + jnp.sum(ac[:, :, None] * xc, axis=1)
    out_ref[...] = acc.astype(out_ref.dtype)           # (S, D)


def _choose_sentence_tile(rows, nt, d, p, x_itemsize, budget_bytes):
    chunk = min(nt, 128)
    per_row = (
        3 * nt * d * x_itemsize       # double-buffered input tile + loaded value
        + nt * d * 2                  # bf16 matmul operand copy
        + nt * p * 4                  # f32 proj
        + nt * p * 2                  # tanh/headroom
        + 8 * nt * 4                  # lane-dense mask/score/exp/att temporaries
        + 2 * chunk * d * 4           # chunked weighted-sum temporaries
        + 3 * d * 4                   # out tile (double-buffered) + accumulator
    )
    fixed = 2 * (d * p * 2 + 2 * p * 4 + 4)           # resident weight/bias blocks
    avail = max(budget_bytes - fixed, per_row * 8)
    tile = avail // max(per_row, 1)
    if rows >= 32:
        tile = min(tile, _round_up(pl.cdiv(rows, 4), 8))   # >=4 grid steps (megacore)
    tile = min(tile, 4096, _round_up(rows, 8))
    return max(8, (int(tile) // 8) * 8)


def word_attention(x, token_mask, wp, bp, ws, bs, *, sentence_tile=None):
    """WordAttention forward.

    x: (B, NS, NT, D) float (f32 or bf16), token_mask: (B, NS, NT) 0/1.
    wp: (D, P), bp: (1, P) or (P,), ws: (P, 1)/(1, P)/(P,), bs: scalar-ish.
    Returns (out: (B, NS, D) x.dtype, mask: (B, NS)).
    """
    B, NS, NT, D = x.shape
    P = wp.shape[1]
    rows = B * NS
    x_itemsize = jnp.dtype(x.dtype).itemsize
    budget, vmem_limit = _vmem_budget()

    if sentence_tile is None:
        sentence_tile = _choose_sentence_tile(rows, NT, D, P, x_itemsize, budget)
    s_tile = max(8, (int(sentence_tile) // 8) * 8)
    padded = _round_up(rows, s_tile)

    xf = x.reshape(rows, NT, D)                        # keep native dtype: no HBM-wide cast
    mf = token_mask.reshape(rows, NT).astype(jnp.float32)
    if padded != rows:
        xf = jnp.pad(xf, ((0, padded - rows), (0, 0), (0, 0)))
        mf = jnp.pad(mf, ((0, padded - rows), (0, 0)))

    wpf = wp.reshape(D, P).astype(jnp.bfloat16)        # MXU operand in bf16
    bpf = bp.reshape(1, P).astype(jnp.float32)
    wsf = ws.reshape(1, P).astype(jnp.float32)         # scorer weight as a lane row
    bsf = jnp.asarray(bs, jnp.float32).reshape(1, 1)

    grid = (padded // s_tile,)

    flops = 2 * padded * NT * D * P + 3 * padded * NT * P + 2 * padded * NT * D
    transcendentals = padded * NT * P + padded * NT     # tanh + exp
    bytes_accessed = (padded * NT * D * x_itemsize + 4 * padded * NT
                      + padded * D * x_itemsize + 2 * D * P + 8 * P + 4)
    cost = pl.CostEstimate(
        flops=int(flops),
        transcendentals=int(transcendentals),
        bytes_accessed=int(bytes_accessed),
    )

    out = pl.pallas_call(
        _word_attention_kernel,
        out_shape=jax.ShapeDtypeStruct((padded, D), x.dtype),
        grid_spec=pltpu.PrefetchScalarGridSpec(
            num_scalar_prefetch=0,
            grid=grid,
            in_specs=[
                pl.BlockSpec((s_tile, NT, D), lambda i: (i, 0, 0)),  # x slab
                pl.BlockSpec((s_tile, NT), lambda i: (i, 0)),        # token mask (lane-dense)
                pl.BlockSpec((D, P), lambda i: (0, 0)),              # att_proj weight (bf16)
                pl.BlockSpec((1, P), lambda i: (0, 0)),              # att_proj bias
                pl.BlockSpec((1, P), lambda i: (0, 0)),              # att_scorer weight (row)
                pl.BlockSpec((1, 1), lambda i: (0, 0)),              # att_scorer bias
            ],
            out_specs=pl.BlockSpec((s_tile, D), lambda i: (i, 0)),
        ),
        compiler_params=pltpu.CompilerParams(
            dimension_semantics=("parallel",),
            vmem_limit_bytes=vmem_limit,
        ),
        cost_estimate=cost,
    )(xf, mf, wpf, bpf, wsf, bsf)

    out = out[:rows].reshape(B, NS, D)
    mask = token_mask[:, :, 0]
    return out, mask


# ---------------------------------------------------------------------------
# ClassificationHead: dense -> tanh -> out_proj (dropout = identity in eval)
# ---------------------------------------------------------------------------
def _classification_head_kernel(x_ref, w1_ref, b1_ref, w2_ref, b2_ref, out_ref):
    # x_ref: (TILE, H)  w1: (H, H) bf16  b1: (1, H) f32
    # w2: (H, L_pad) bf16  b2: (1, L_pad) f32  out: (TILE, L_pad) f32
    h = jnp.tanh(
        jnp.dot(x_ref[...].astype(jnp.bfloat16), w1_ref[...],
                preferred_element_type=jnp.float32) + b1_ref[...]
    )
    out_ref[...] = (
        jnp.dot(h.astype(jnp.bfloat16), w2_ref[...],
                preferred_element_type=jnp.float32) + b2_ref[...]
    ).astype(out_ref.dtype)


def _choose_row_tile(rows, h, l_pad, x_itemsize, budget_bytes):
    per_row = (
        3 * h * x_itemsize            # double-buffered input + loaded value
        + h * 2                       # bf16 cast of x
        + h * 4 + h * 2               # f32 hidden + bf16 hidden
        + 3 * l_pad * 4               # out tile (double-buffered) + value
    )
    fixed = 2 * ((h * h + h * l_pad) * 2 + (h + l_pad) * 4)
    avail = max(budget_bytes - fixed, per_row * 8)
    tile = avail // max(per_row, 1)
    if rows >= 32:
        tile = min(tile, _round_up(pl.cdiv(rows, 4), 8))   # >=4 grid steps (megacore)
    tile = min(tile, 4096, _round_up(rows, 8))
    return max(8, (int(tile) // 8) * 8)


def classification_head(x, w1, b1, w2, b2, *, row_tile=None):
    """Fused TimeDistributedDense -> tanh -> TimeDistributedDense.

    x: (..., H); returns (..., L) float32."""
    H = x.shape[-1]
    L = w2.shape[-1]
    L_pad = _round_up(L, 128)          # lane-dense output block (unmasked stores)
    lead = x.shape[:-1]
    rows = math.prod(lead) if lead else 1
    x_itemsize = jnp.dtype(x.dtype).itemsize
    budget, vmem_limit = _vmem_budget()

    if row_tile is None:
        row_tile = _choose_row_tile(rows, H, L_pad, x_itemsize, budget)
    tile = max(8, (min(int(row_tile), 4096, _round_up(rows, 8)) // 8) * 8)
    padded = _round_up(rows, tile)

    xf = x.reshape(rows, H)            # keep native dtype
    if padded != rows:
        xf = jnp.pad(xf, ((0, padded - rows), (0, 0)))
    w1f = w1.reshape(H, H).astype(jnp.bfloat16)
    b1f = b1.reshape(1, H).astype(jnp.float32)
    w2f = jnp.pad(w2.reshape(H, L).astype(jnp.bfloat16), ((0, 0), (0, L_pad - L)))
    b2f = jnp.pad(b2.reshape(1, L).astype(jnp.float32), ((0, 0), (0, L_pad - L)))

    cost = pl.CostEstimate(
        flops=int(2 * padded * H * (H + L_pad)),
        transcendentals=int(padded * H),
        bytes_accessed=int(padded * H * x_itemsize + 4 * padded * L_pad
                           + 2 * (H * H + H * L_pad) + 4 * (H + L_pad)),
    )

    out = pl.pallas_call(
        _classification_head_kernel,
        out_shape=jax.ShapeDtypeStruct((padded, L_pad), jnp.float32),
        grid_spec=pltpu.PrefetchScalarGridSpec(
            num_scalar_prefetch=0,
            grid=(padded // tile,),
            in_specs=[
                pl.BlockSpec((tile, H), lambda i: (i, 0)),
                pl.BlockSpec((H, H), lambda i: (0, 0)),
                pl.BlockSpec((1, H), lambda i: (0, 0)),
                pl.BlockSpec((H, L_pad), lambda i: (0, 0)),
                pl.BlockSpec((1, L_pad), lambda i: (0, 0)),
            ],
            out_specs=pl.BlockSpec((tile, L_pad), lambda i: (i, 0)),
        ),
        compiler_params=pltpu.CompilerParams(
            dimension_semantics=("parallel",),
            vmem_limit_bytes=vmem_limit,
        ),
        cost_estimate=cost,
    )(xf, w1f, b1f, w2f, b2f)

    return out[:rows, :L].reshape(*lead, L)


# ---------------------------------------------------------------------------
# Pure-JAX references (mirror the torch code, eval-mode dropout, f32 math)
# ---------------------------------------------------------------------------
def word_attention_ref(x, token_mask, wp, bp, ws, bs):
    proj = jnp.tanh(x @ wp + bp.reshape(-1))
    scores = (proj @ ws.reshape(-1, 1))[..., 0] + jnp.asarray(bs).reshape(())
    masked = jnp.where(token_mask > 0, scores, -jnp.inf)
    mx = jnp.max(masked, axis=-1, keepdims=True)
    e = jnp.exp(masked - mx)
    att = e / jnp.sum(e, axis=-1, keepdims=True)
    att = jnp.where(jnp.isnan(att), 0.0, att)
    out = jnp.einsum("bst,bstd->bsd", att, x)
    return out, token_mask[:, :, 0]


def classification_head_ref(x, w1, b1, w2, b2):
    h = jnp.tanh(x @ w1 + b1.reshape(-1))
    return h @ w2 + b2.reshape(-1)


if __name__ == "__main__":
    # Small shapes consistent with the module (bert_dim -> D, PROJ_SIZE == D).
    B, NS, NT = 2, 3, 8          # paragraphs, sentences, tokens per sentence
    D = 32                       # hidden size (bert_dim)
    P = 32                       # WordAttention PROJ_SIZE == bert_dim

    key = jax.random.PRNGKey(0)
    keys = jax.random.split(key, 8)

    x_tokens = jax.random.normal(keys[0], (B, NS, NT, D), dtype=jnp.float32)
    token_mask = (jax.random.uniform(keys[1], (B, NS, NT)) > 0.3).astype(jnp.float32)
    token_mask = token_mask.at[1, 2, :].set(0.0)     # fully-masked sentence path

    lim_p = 1.0 / math.sqrt(D)
    wp = jax.random.uniform(keys[2], (D, P), minval=-lim_p, maxval=lim_p, dtype=jnp.float32)
    bp = jax.random.uniform(keys[3], (1, P), minval=-lim_p, maxval=lim_p, dtype=jnp.float32)
    lim_s = 1.0 / math.sqrt(P)
    ws = jax.random.uniform(keys[4], (P, 1), minval=-lim_s, maxval=lim_s, dtype=jnp.float32)
    bs = jax.random.uniform(keys[5], (1, 1), minval=-lim_s, maxval=lim_s, dtype=jnp.float32)

    # --- WordAttention ---
    sent_reps, sent_mask = word_attention(x_tokens, token_mask, wp, bp, ws, bs)
    sent_reps = jax.block_until_ready(sent_reps)
    sent_mask = jax.block_until_ready(sent_mask)

    ref_reps, ref_mask = word_attention_ref(x_tokens, token_mask, wp, bp, ws, bs)
    assert sent_reps.shape == (B, NS, D) and sent_mask.shape == (B, NS)
    # bf16 MXU operands (f32 accumulation) -> relaxed tolerance vs f32 reference.
    assert jnp.allclose(sent_reps, ref_reps, atol=3e-2, rtol=3e-2)
    assert jnp.array_equal(sent_mask, ref_mask)

    # --- ClassificationHeads (discourse on sentence reps, citation/span on tokens) ---
    bert_out = jax.random.normal(keys[6], (B, 16, D), dtype=jnp.float32)
    head_inputs = {"discourse": sent_reps, "citation": bert_out, "span": bert_out}
    head_sizes = {"discourse": 7, "citation": 6, "span": 4}
    hkeys = jax.random.split(keys[7], 12)
    lim_h = 1.0 / math.sqrt(D)
    for idx, (name, L) in enumerate(head_sizes.items()):
        k1, k2, k3, k4 = hkeys[4 * idx: 4 * idx + 4]
        w1 = jax.random.uniform(k1, (D, D), minval=-lim_h, maxval=lim_h, dtype=jnp.float32)
        b1 = jax.random.uniform(k2, (1, D), minval=-lim_h, maxval=lim_h, dtype=jnp.float32)
        w2 = jax.random.uniform(k3, (D, L), minval=-lim_h, maxval=lim_h, dtype=jnp.float32)
        b2 = jax.random.uniform(k4, (1, L), minval=-lim_h, maxval=lim_h, dtype=jnp.float32)
        xin = head_inputs[name]
        got = jax.block_until_ready(classification_head(xin, w1, b1, w2, b2))
        want = classification_head_ref(xin, w1, b1, w2, b2)
        assert got.shape == xin.shape[:-1] + (L,), name
        assert jnp.allclose(got, want, atol=3e-2, rtol=3e-2), name

    print("KERNEL_OK")
</pallas_src>

<mosaic_0001>
module attributes {stable_mosaic.version = 11 : i64} {
  func.func @_word_attention_kernel(%arg0: i32, %arg1: memref<8x8x32xf32, #tpu.memory_space<vmem>>, %arg2: memref<8x8xf32, #tpu.memory_space<vmem>>, %arg3: memref<32x32xbf16, #tpu.memory_space<vmem>>, %arg4: memref<1x32xf32, #tpu.memory_space<vmem>>, %arg5: memref<1x32xf32, #tpu.memory_space<vmem>>, %arg6: memref<1x1xf32, #tpu.memory_space<vmem>>, %arg7: memref<8x32xf32, #tpu.memory_space<vmem>>) attributes {dimension_semantics = [#tpu.dimension_semantics<parallel>], iteration_bounds = array<i64: 1>, scalar_prefetch = 0 : i64, scratch_operands = 0 : i64, tpu.core_type = #tpu.core_type<tc>, window_params = [{transform_indices = @transform_0, window_bounds = array<i64: 8, 8, 32>}, {transform_indices = @transform_1, window_bounds = array<i64: 8, 8>}, {pipeline_mode = #tpu.pipeline_mode<synchronous>, transform_indices = @transform_2, window_bounds = array<i64: 32, 32>}, {pipeline_mode = #tpu.pipeline_mode<synchronous>, transform_indices = @transform_3, window_bounds = array<i64: 1, 32>}, {pipeline_mode = #tpu.pipeline_mode<synchronous>, transform_indices = @transform_4, window_bounds = array<i64: 1, 32>}, {pipeline_mode = #tpu.pipeline_mode<synchronous>, transform_indices = @transform_5, window_bounds = array<i64: 1, 1>}, {transform_indices = @transform_6, window_bounds = array<i64: 8, 32>}]} {
    %c0 = arith.constant 0 : index
    %c0_0 = arith.constant 0 : index
    %c0_1 = arith.constant 0 : index
    %0 = vector.load %arg1[%c0, %c0_0, %c0_1] : memref<8x8x32xf32, #tpu.memory_space<vmem>>, vector<8x8x32xf32>
    %1 = vector.shape_cast %0 : vector<8x8x32xf32> to vector<64x32xf32>
    %2 = arith.truncf %1 : vector<64x32xf32> to vector<64x32xbf16>
    %c0_2 = arith.constant 0 : index
    %c0_3 = arith.constant 0 : index
    %3 = vector.load %arg3[%c0_2, %c0_3] : memref<32x32xbf16, #tpu.memory_space<vmem>>, vector<32x32xbf16>
    %cst = arith.constant dense<0.000000e+00> : vector<64x32xf32>
    %4 = tpu.matmul %2, %3, %cst {dimension_numbers = #tpu.dot_dimension_numbers<[1], [0], [0], [1], [0, 0, 1, 1], [], []>} : vector<64x32xbf16>, vector<32x32xbf16>, vector<64x32xf32> -> vector<64x32xf32>
    %c0_4 = arith.constant 0 : index
    %c0_5 = arith.constant 0 : index
    %5 = vector.load %arg4[%c0_4, %c0_5] : memref<1x32xf32, #tpu.memory_space<vmem>>, vector<1x32xf32>
    %6 = vector.broadcast %5 : vector<1x32xf32> to vector<64x32xf32>
    %7 = arith.addf %4, %6 : vector<64x32xf32>
    %8 = math.tanh %7 : vector<64x32xf32>
    %9 = vector.shape_cast %8 : vector<64x32xf32> to vector<8x8x32xf32>
    %c0_6 = arith.constant 0 : index
    %c0_7 = arith.constant 0 : index
    %10 = vector.load %arg5[%c0_6, %c0_7] : memref<1x32xf32, #tpu.memory_space<vmem>>, vector<1x32xf32>
    %11 = vector.shape_cast %10 : vector<1x32xf32> to vector<1x1x32xf32>
    %12 = vector.broadcast %11 : vector<1x1x32xf32> to vector<8x8x32xf32>
    %13 = arith.mulf %9, %12 : vector<8x8x32xf32>
    %cst_8 = arith.constant dense<0.000000e+00> : vector<8x8xf32>
    %14 = vector.multi_reduction <add>, %13, %cst_8 [2] : vector<8x8x32xf32> to vector<8x8xf32>
    %c0_9 = arith.constant 0 : index
    %c0_10 = arith.constant 0 : index
    %15 = vector.load %arg6[%c0_9, %c0_10] : memref<1x1xf32, #tpu.memory_space<vmem>>, vector<1x1xf32>
    %16 = vector.broadcast %15 : vector<1x1xf32> to vector<8x8xf32>
    %17 = arith.addf %14, %16 : vector<8x8xf32>
    %c0_11 = arith.constant 0 : index
    %c0_12 = arith.constant 0 : index
    %18 = vector.load %arg2[%c0_11, %c0_12] : memref<8x8xf32, #tpu.memory_space<vmem>>, vector<8x8xf32>
    %cst_13 = arith.constant 0.000000e+00 : f32
    %19 = vector.broadcast %cst_13 : f32 to vector<8x8xf32>
    %20 = arith.cmpf ogt, %18, %19 : vector<8x8xf32>
    %cst_14 = arith.constant 0xFF800000 : f32
    %21 = vector.broadcast %cst_14 : f32 to vector<8x8xf32>
    %22 = arith.select %20, %17, %21 : vector<8x8xi1>, vector<8x8xf32>
    %cst_15 = arith.constant dense<0xFF800000> : vector<8xf32>
    %23 = vector.multi_reduction <maximumf>, %22, %cst_15 [1] : vector<8x8xf32> to vector<8xf32>
    %24 = vector.shape_cast %23 : vector<8xf32> to vector<8x1xf32>
    %25 = tpu.weird %24 : vector<8x1xf32> -> vector<8x1xi1>
    %cst_16 = arith.constant dense<true> : vector<8x1xi1>
    %26 = arith.xori %25, %cst_16 : vector<8x1xi1>
    %cst_17 = arith.constant 0.000000e+00 : f32
    %27 = vector.broadcast %cst_17 : f32 to vector<8x1xf32>
    %28 = arith.select %26, %24, %27 : vector<8x1xi1>, vector<8x1xf32>
    %cst_18 = arith.constant 0.000000e+00 : f32
    %29 = vector.broadcast %cst_18 : f32 to vector<8x8xf32>
    %30 = arith.cmpf ogt, %18, %29 : vector<8x8xf32>
    %31 = vector.broadcast %28 : vector<8x1xf32> to vector<8x8xf32>
    %32 = arith.subf %22, %31 : vector<8x8xf32>
    %33 = math.exp %32 : vector<8x8xf32>
    %cst_19 = arith.constant 0.000000e+00 : f32
    %34 = vector.broadcast %cst_19 : f32 to vector<8x8xf32>
    %35 = arith.select %30, %33, %34 : vector<8x8xi1>, vector<8x8xf32>
    %cst_20 = arith.constant dense<0.000000e+00> : vector<8xf32>
    %36 = vector.multi_reduction <add>, %35, %cst_20 [1] : vector<8x8xf32> to vector<8xf32>
    %37 = vector.shape_cast %36 : vector<8xf32> to vector<8x1xf32>
    %cst_21 = arith.constant 1.000000e-30 : f32
    %38 = vector.broadcast %cst_21 : f32 to vector<8x1xf32>
    %39 = arith.maximumf %37, %38 : vector<8x1xf32>
    %40 = tpu.reciprocal %39 {approx = true} : vector<8x1xf32> -> vector<8x1xf32>
    %41 = vector.broadcast %40 : vector<8x1xf32> to vector<8x8xf32>
    %42 = arith.mulf %35, %41 : vector<8x8xf32>
    %cst_22 = arith.constant 0.000000e+00 : f32
    %43 = vector.broadcast %cst_22 : f32 to vector<8x32xf32>
    %44 = vector.shape_cast %42 : vector<8x8xf32> to vector<8x8x1xf32>
    %45 = vector.broadcast %44 : vector<8x8x1xf32> to vector<8x8x32xf32>
    %46 = arith.mulf %45, %0 : vector<8x8x32xf32>
    %cst_23 = arith.constant dense<0.000000e+00> : vector<8x32xf32>
    %47 = vector.multi_reduction <add>, %46, %cst_23 [1] : vector<8x8x32xf32> to vector<8x32xf32>
    %48 = arith.addf %43, %47 : vector<8x32xf32>
    %c0_24 = arith.constant 0 : index
    %c0_25 = arith.constant 0 : index
    %49 = vector.load %arg7[%c0_24, %c0_25] : memref<8x32xf32, #tpu.memory_space<vmem>>, vector<8x32xf32>
    tpu.vector_store %arg7[%c0_24, %c0_25], %48 {strides = array<i32>} : memref<8x32xf32, #tpu.memory_space<vmem>>, vector<8x32xf32>,
    return
  }
  func.func @transform_0(%arg0: i32) -> (i32, i32, i32) {
    %c0_i32 = arith.constant 0 : i32
    %c0_i32_0 = arith.constant 0 : i32
    %c0_i32_1 = arith.constant 0 : i32
    return %arg0, %c0_i32, %c0_i32_0 : i32, i32, i32
  }
  func.func @transform_1(%arg0: i32) -> (i32, i32) {
    %c0_i32 = arith.constant 0 : i32
    %c0_i32_0 = arith.constant 0 : i32
    return %arg0, %c0_i32 : i32, i32
  }
  func.func @transform_2(%arg0: i32) -> (i32, i32) {
    %c0_i32 = arith.constant 0 : i32
    %c0_i32_0 = arith.constant 0 : i32
    %c0_i32_1 = arith.constant 0 : i32
    return %c0_i32, %c0_i32_0 : i32, i32
  }
  func.func @transform_3(%arg0: i32) -> (i32, i32) {
    %c0_i32 = arith.constant 0 : i32
    %c0_i32_0 = arith.constant 0 : i32
    %c0_i32_1 = arith.constant 0 : i32
    return %c0_i32, %c0_i32_0 : i32, i32
  }
  func.func @transform_4(%arg0: i32) -> (i32, i32) {
    %c0_i32 = arith.constant 0 : i32
    %c0_i32_0 = arith.constant 0 : i32
    %c0_i32_1 = arith.constant 0 : i32
    return %c0_i32, %c0_i32_0 : i32, i32
  }
  func.func @transform_5(%arg0: i32) -> (i32, i32) {
    %c0_i32 = arith.constant 0 : i32
    %c0_i32_0 = arith.constant 0 : i32
    %c0_i32_1 = arith.constant 0 : i32
    return %c0_i32, %c0_i32_0 : i32, i32
  }
  func.func @transform_6(%arg0: i32) -> (i32, i32) {
    %c0_i32 = arith.constant 0 : i32
    %c0_i32_0 = arith.constant 0 : i32
    return %arg0, %c0_i32 : i32, i32
  }
}

</mosaic_0001>

<bundles_post_ra>
// kernel: tpu_custom_call.1
= control target key start
LH: loop header
LB: loop body
LE: loop exit
PB: predicated region body
PF: predicated region fallthrough
CT: control target
= control target key end

     0   :  { %s778_s0 = inlined_call_operand.hbm [shape: f32[8,8,32], index: 0, kind: input, shape index: {}]   ;;  %s779_s1 = inlined_call_operand.hbm [shape: f32[8,8], index: 1, kind: input, shape index: {}]   ;;  %s780_s2 = inlined_call_operand.hbm [shape: bf16[32,32], index: 2, kind: input, shape index: {}]   ;;  %s781_s3 = inlined_call_operand.vmem [shape: f32[1,32], index: 3, kind: input, shape index: {}]   ;;  %s782_s4 = inlined_call_operand.vmem [shape: f32[1,32], index: 4, kind: input, shape index: {}]   ;;  %s783_s5 = inlined_call_operand.<no memory space> [shape: f32[1,1], index: 5, kind: input, shape index: {}]   ;;  %s784_s6 = inlined_call_operand.hbm [shape: f32[8,32], index: 6, kind: output, shape index: {}]  }
   0x1   :  { %v11_v0 = vstv %s783_s5 }
   0x2   :  { %12 = vst [vmem:[#allocation2] sm:$0x1] %v11_v0 }
   0x3   :  { %13 = vsyncpa [#allocation4], 0 }
   0x4   :  { %14 = vsyncpa [#allocation7], 0 }
   0x5   :  { %15 = vsyncpa [#allocation5], 0  ;;  %s632_s23 = smov [#allocation6]   ;;  %s633_s25 = smov [#allocation3]  }
   0x6   :  { %s34_s24 = sshll.u32 %s632_s23, 4  ;;  %s21_s26 = sshll.u32 %s633_s25, 4  ;;  %s35_s24 = int_to_ptr.vmem [resolvable:$true] %s34_s24  ;;  %s22_s26 = int_to_ptr.vmem [resolvable:$true] %s21_s26 }
   0x7   :  { %s554_s27 = scalar_lea.vmem %s35_s24, 128  ;;  %p559_p1 = scmp.lt.s32.totalorder %s35_s24, %s35_s24 }
   0x8   :  { %p555_p0 = scmp.ne.s32.totalorder %s35_s24, %s554_s27  ;;  %p560_p2 = scmp.lt.s32.totalorder %s554_s27, %s554_s27 }
   0xa   :  { %p561_p3 = por %p560_p2, %p559_p1 }
   0xc   :  { %p562_p4 = pnand %p561_p3, %p555_p0 }
   0xe   :  { %565 = shalt.err (!%p562_p4)
}
   0xf   :  { %37 = dma.hbm_to_vmem [thread:$0]  %s779_s1, 128, %s35_s24, [#allocation7]  }
  0x10   :  { %s574_s5 = scalar_lea.vmem %s22_s26, 1024  ;;  %p579_p6 = scmp.lt.s32.totalorder %s22_s26, %s22_s26 }
  0x11   :  { %p575_p5 = scmp.ne.s32.totalorder %s22_s26, %s574_s5  ;;  %p580_p7 = scmp.lt.s32.totalorder %s574_s5, %s574_s5 }
  0x13   :  { %p581_p8 = por %p580_p7, %p579_p6 }
  0x15   :  { %p582_p9 = pnand %p581_p8, %p575_p5 }
  0x17   :  { %585 = shalt.err (!%p582_p9)
}
  0x18   :  { %s634_s30 = smov 128   ;;  %s635_s7 = smov 8  }
  0x19   :  { %27 = dma.hbm_to_vmem [thread:$0]  %s778_s0, 1024, %s22_s26, [#allocation4], %s634_s30, %s634_s30, %s635_s7  }
  0x1a   :  { %s636_s10 = smov [#allocation8]  }
  0x1b   :  { %s43_s11 = sshll.u32 %s636_s10, 4  ;;  %s44_s11 = int_to_ptr.vmem [resolvable:$true] %s43_s11 }
  0x1c   :  { %s594_s12 = scalar_lea.vmem %s44_s11, 256  ;;  %p599_p11 = scmp.lt.s32.totalorder %s44_s11, %s44_s11 }
  0x1d   :  { %p595_p10 = scmp.ne.s32.totalorder %s44_s11, %s594_s12  ;;  %p600_p12 = scmp.lt.s32.totalorder %s594_s12, %s594_s12 }
  0x1f   :  { %p601_p13 = por %p600_p12, %p599_p11 }
  0x21   :  { %p602_p0 = pnand %p601_p13, %p595_p10 }
  0x23   :  { %605 = shalt.err (!%p602_p0)
}
  0x24   :  { %s637_s1 = smov 64   ;;  %s638_s13 = smov 4  }
  0x25   :  { %49 = dma.hbm_to_vmem [thread:$0]  %s780_s2, 256, %s44_s11, [#allocation7], %s637_s1, %s637_s1, %s638_s13  }
  0x26   :  { %626 = dma.done.wait [#allocation4], 1024  }
  0x27   :  { %627 = vsyncadd [#allocation4], 4294966272 }
  0x28   :  { %628 = dma.done.wait [#allocation7], 384  }
  0x29   :  { %629 = vsyncadd [#allocation7], 4294966912  ;;  %v524_v1 = vld [vmem:[#allocation8 + $0x8] sm:$0xff]   ;;  %v525_v2 = vld [vmem:[#allocation8] sm:$0xff]   ;;  %vm101_vm0 = vcmask 261120   ;;  %v639_v15 = vmov 0   ;;  %v254_v63 = vlaneseq }
  0x2a   :  { %497 = vmatprep.subr.bf16.mxu0 %v524_v1  ;;  %509 = vmatprep.subr.bf16.mxu1 %v524_v1  ;;  %v689_v3 = vld [vmem:[#allocation3] sm:$0xff]  ;;  %v691_v4 = vld [vmem:[#allocation3 + $0x8] sm:$0xff]  ;;  %v699_v8 = vld [vmem:[#allocation3 + $0x10] sm:$0xff]  ;;  %vm288_vm1 = vcmask 1041409   ;;  %vm290_vm2 = vcmask 1042434   ;;  %vm292_vm3 = vcmask 1043459  }
  0x2b   :  { %v693_v5 = vld [vmem:[#allocation3 + $0x20] sm:$0xff]  ;;  %498 = vmatpush3.bf16.msra.mxu0 %v524_v1  ;;  %511 = vmatpush3.bf16.msra.mxu1 %v524_v1  ;;  %v74_v6 = vpack.c.bf16 %v691_v4, %v689_v3  ;;  %v697_v7 = vld [vmem:[#allocation3 + $0x28] sm:$0xff]  ;;  %v701_v9 = vld [vmem:[#allocation3 + $0x18] sm:$0xff]  ;;  %v255_v1 = vand.u32 127, %v254_v63  ;;  %vm294_vm4 = vcmask 1044484   ;;  %vm296_vm5 = vcmask 1045509  }
  0x2c   :  { %499 = vmatprep.subr.bf16.mxu0 %v525_v2  ;;  %510 = vmatprep.subr.bf16.mxu1 %v525_v2  ;;  %v76_v10 = vpack.c.bf16 %v697_v7, %v693_v5  ;;  %v705_v11 = vld [vmem:[#allocation3 + $0x30] sm:$0xff]  ;;  %v707_v12 = vld [vmem:[#allocation3 + $0x38] sm:$0xff]  ;;  %v75_v13 = vpack.c.bf16 %v701_v9, %v699_v8  ;;  %vm298_vm6 = vcmask 1046534   ;;  %vm300_vm7 = vcmask 1047559  }
  0x2d   :  { %501 = vmatprep.mubr.msk.bf16.mxu0 %vm101_vm0, %v74_v6  ;;  %v77_v14 = vpack.c.bf16 %v707_v12, %v705_v11  ;;  %523 = vset.pattern.permute.xlu0 %v639_v15  ;;  %v482_v16 = vld [vmem:[%s781_s3] ss:$0 sm:$0xff]  ;;  %vm304_vm9 = vcmask 64512   ;;  %vm640_vm11 = vmmov 1  }
  0x2e   :  { %505 = vmatprep.mubr.msk.bf16.mxu1 %vm101_vm0, %v76_v10  ;;  %v489_v33 = vld [vmem:[%s782_s4] ss:$0 sm:$0xff]  ;;  %s641_s4 = smov [#allocation9]  }
  0x2f   :  { %500 = vmatpush3.bf16.msra.mxu0 %v525_v2  ;;  %512 = vmatpush3.bf16.msra.mxu1 %v525_v2  ;;  %v490_v58 = vld [vmem:[#allocation2] ss:$0 sm:$0xff]  ;;  %v731_v2 = vshrl.u32 %v254_v63, 7  ;;  %s472_s17 = sshll.u32 %s641_s4, 4  ;;  %s473_s17 = int_to_ptr.vmem [resolvable:$true] %s472_s17 }
  0x30   :  { %s606_s18 = scalar_lea.vmem %s473_s17, 128  ;;  %p611_p2 = scmp.lt.s32.totalorder %s473_s17, %s473_s17 }
  0x31   :  { %v351_v63 = vsub.s32 4, %v731_v2  ;;  %p607_p1 = scmp.ne.s32.totalorder %s473_s17, %s606_s18  ;;  %p612_p3 = scmp.lt.s32.totalorder %s606_s18, %s606_s18 }
  0x32   :  { %502 = vmatmul.mubr.msk.bf16.vlgmr.msra.gmra.mxu0 %vm101_vm0, %v75_v13  ;;  %506 = vmatmul.mubr.msk.bf16.vlgmr.msra.gmra.mxu1 %vm101_vm0, %v77_v14  ;;  %v258_v13 = vsub.s32 %v255_v1, %v731_v2  ;;  %v358_v1 = vsub.s32 5, %v731_v2 }
  0x33   :  { %p613_p4 = por %p612_p3, %p611_p2 }
  0x35   :  { %p614_p5 = pnand %p613_p4, %p607_p1 }
  0xf2   :  { %v503_v17 = vpop.f32.mrf.mxu0  ;;  %v507_v18 = vpop.f32.mrf.mxu1 }
  0xf3   :  { %v157_v19 = vadd.f32 %v503_v17, %v482_v16  ;;  %v173_v20 = vadd.f32 %v507_v18, %v482_v16 }
  0xf4   :  { %v148_v21 = vpop.f32.mrf.mxu0  ;;  %v164_v22 = vpop.f32.mrf.mxu1 }
  0xf5   :  { %526 = vtanh.f32 %v157_v19  ;;  %v149_v23 = vadd.f32 %v482_v16, %v148_v21  ;;  %v165_v24 = vadd.f32 %v482_v16, %v164_v22 }
  0xf6   :  { %528 = vtanh.f32 %v173_v20  ;;  %v504_v25 = vpop.f32.mrf.mxu0  ;;  %v508_v26 = vpop.f32.mrf.mxu1 }
  0xf7   :  { %530 = vtanh.f32 %v149_v23  ;;  %v160_v27 = vadd.f32 %v504_v25, %v482_v16  ;;  %v176_v30 = vadd.f32 %v508_v26, %v482_v16 }
  0xf8   :  { %v151_v28 = vpop.f32.mrf.mxu0  ;;  %v167_v29 = vpop.f32.mrf.mxu1 }
  0xf9   :  { %532 = vtanh.f32 %v160_v27  ;;  %v168_v31 = vadd.f32 %v482_v16, %v167_v29  ;;  %v152_v32 = vadd.f32 %v482_v16, %v151_v28  ;;  %v244_v29 = vld [vmem:[#allocation6] sm:$0xff] }
  0xfa   :  { %534 = vtanh.f32 %v165_v24  ;;  %vm245_vm8 = vcmp.gt.f32.partialorder %v244_v29, 0.0 }
  0xfb   :  { %536 = vtanh.f32 %v168_v31 }
  0xfc   :  { %538 = vtanh.f32 %v176_v30 }
  0xfd   :  { %540 = vtanh.f32 %v152_v32 }
 0x102   :  { %v527_v34 = vpop.eup %526 }
 0x103   :  { %v529_v35 = vpop.eup %528  ;;  %v196_v36 = vmul.f32 %v527_v34, %v489_v33 }
 0x104   :  { %v531_v37 = vpop.eup %530  ;;  %v200_v38 = vmul.f32 %v529_v35, %v489_v33 }
 0x105   :  { %v208_v39 = vsel %vm101_vm0, %v196_v36, 0.0  ;;  %v194_v42 = vmul.f32 %v531_v37, %v489_v33 }
 0x106   :  { %v533_v40 = vpop.eup %532  ;;  %v220_v41 = vsel %vm101_vm0, %v200_v38, 0.0  ;;  %209 = vadd.xlane.f32.xlu1 %v208_v39 }
 0x107   :  { %v535_v43 = vpop.eup %534  ;;  %221 = vadd.xlane.f32.xlu0 %v220_v41  ;;  %v197_v44 = vmul.f32 %v533_v40, %v489_v33  ;;  %v202_v48 = vsel %vm101_vm0, %v194_v42, 0.0 }
 0x108   :  { %v537_v45 = vpop.eup %536  ;;  %v198_v50 = vmul.f32 %v535_v43, %v489_v33 }
 0x109   :  { %v211_v46 = vsel %vm101_vm0, %v197_v44, 0.0  ;;  %v539_v47 = vpop.eup %538  ;;  %v199_v49 = vmul.f32 %v537_v45, %v489_v33 }
 0x10a   :  { %212 = vadd.xlane.f32.xlu1 %v211_v46  ;;  %v541_v51 = vpop.eup %540  ;;  %v201_v53 = vmul.f32 %v539_v47, %v489_v33  ;;  %v214_v54 = vsel %vm101_vm0, %v198_v50, 0.0 }
 0x10b   :  { %203 = vadd.xlane.f32.xlu0 %v202_v48  ;;  %v217_v52 = vsel %vm101_vm0, %v199_v49, 0.0  ;;  %v195_v55 = vmul.f32 %v541_v51, %v489_v33  ;;  %v365_v51 = vsub.s32 6, %v731_v2 }
 0x10c   :  { %v223_v56 = vsel %vm101_vm0, %v201_v53, 0.0 }
 0x10d   :  { %v205_v57 = vsel %vm101_vm0, %v195_v55, 0.0 }
 0x10e   :  { %218 = vadd.xlane.f32.xlu1 %v217_v52  ;;  %v323_v52 = vsub.s32 0, %v731_v2 }
 0x10f   :  { %215 = vadd.xlane.f32.xlu0 %v214_v54 }
 0x112   :  { %224 = vadd.xlane.f32.xlu1 %v223_v56 }
 0x113   :  { %206 = vadd.xlane.f32.xlu0 %v205_v57  ;;  %v330_v57 = vsub.s32 1, %v731_v2 }
 0x129   :  { %233 = vperm.xlu0 %523, %v490_v58  }
 0x18f   :  { %v210_v61 = vpop.xlane.xlu1 %209 }
 0x190   :  { %v222_v59 = vpop.xlane.xlu0 %221 }
 0x193   :  { %v213_v0 = vpop.xlane.xlu1 %212 }
 0x194   :  { %v204_v60 = vpop.xlane.xlu0 %203 }
 0x197   :  { %v219_v10 = vpop.xlane.xlu1 %218 }
 0x198   :  { %v216_v62 = vpop.xlane.xlu0 %215 }
 0x19b   :  { %v225_v24 = vpop.xlane.xlu1 %224 }
 0x19c   :  { %v207_v6 = vpop.xlane.xlu0 %206 }
 0x1a4   :  { %v234_v14 = vpop.permute.xlu0 %233 }
 0x1a5   :  { %v236_v15 = vadd.f32 %v234_v14, %v204_v60  ;;  %v237_v16 = vadd.f32 %v234_v14, %v207_v6  ;;  %v238_v17 = vadd.f32 %v234_v14, %v210_v61  ;;  %v239_v18 = vadd.f32 %v234_v14, %v213_v0 }
 0x1a6   :  { %v240_v19 = vadd.f32 %v234_v14, %v216_v62  ;;  %v241_v20 = vadd.f32 %v234_v14, %v219_v10  ;;  %v242_v25 = vadd.f32 %v234_v14, %v222_v59  ;;  %v243_v26 = vadd.f32 %v234_v14, %v225_v24 }
 0x1a7   :  { %v259_v21 = vrot.slane %v236_v15, %v258_v13  ;;  %v263_v22 = vrot.slane %v237_v16, %v258_v13  ;;  %v267_v23 = vrot.slane %v238_v17, %v258_v13  ;;  %v271_v27 = vrot.slane %v239_v18, %v258_v13 }
 0x1a8   :  { %v275_v30 = vrot.slane %v240_v19, %v258_v13  ;;  %v279_v32 = vrot.slane %v241_v20, %v258_v13  ;;  %v283_v34 = vrot.slane %v242_v25, %v258_v13  ;;  %v287_v36 = vrot.slane %v243_v26, %v258_v13 }
 0x1a9   :  { %v289_v28 = vsel %vm288_vm1, %v263_v22, %v259_v21  ;;  %v337_v59 = vsub.s32 2, %v731_v2  ;;  %v344_v61 = vsub.s32 3, %v731_v2  ;;  %v372_v10 = vsub.s32 7, %v731_v2 }
 0x1aa   :  { %v291_v31 = vsel %vm290_vm2, %v267_v23, %v289_v28 }
 0x1ab   :  { %v293_v33 = vsel %vm292_vm3, %v271_v27, %v291_v31 }
 0x1ac   :  { %v295_v35 = vsel %vm294_vm4, %v275_v30, %v293_v33 }
 0x1ad   :  { %v297_v37 = vsel %vm296_vm5, %v279_v32, %v295_v35 }
 0x1ae   :  { %v299_v38 = vsel %vm298_vm6, %v283_v34, %v297_v37 }
 0x1af   :  { %v301_v39 = vsel %vm300_vm7, %v287_v36, %v299_v38 }
 0x1b0   :  { %v303_v40 = vsel %vm245_vm8, %v301_v39, -inf }
 0x1b1   :  { %v305_v41 = vsel %vm304_vm9, %v303_v40, -inf }
 0x1b2   :  { %306 = vmax.xlane.f32.xlu1 %v305_v41 }
 0x23b   :  { %v307_v42 = vpop.xlane.xlu1 %306 }
 0x23c   :  { %vm308_vm10 = vweird.f32 %v307_v42 }
 0x23d   :  { %vm309_vm12 = vmxor %vm308_vm10, %vm640_vm11 }
 0x23e   :  { %v310_v43 = vsel %vm309_vm12, %v307_v42, 0.0 }
 0x23f   :  { %v311_v44 = vsub.f32 %v303_v40, %v310_v43 }
 0x241   :  { %v312_v45 = vmul.f32 1.442695, %v311_v44 }
 0x243   :  { %542 = vpow2.f32 %v312_v45 }
 0x250   :  { %v543_v46 = vpop.eup %542 }
 0x251   :  { %v314_v47 = vsel %vm245_vm8, %v543_v46, 0.0 }
 0x252   :  { %v315_v48 = vsel %vm304_vm9, %v314_v47, 0.0 }
 0x253   :  { %316 = vadd.xlane.f32.xlu1 %v315_v48 }
 0x2dc   :  { %v317_v49 = vpop.xlane.xlu1 %316 }
 0x2dd   :  { %v318_v50 = vmax.f32 %v317_v49, 1e-30 }
 0x2df   :  { %544 = vrcp.f32 %v318_v50 }
 0x2ec   :  { %v545_v53 = vpop.eup %544 }
 0x2ed   :  { %v320_v54 = vmul.f32 %v545_v53, %v314_v47 }
 0x2ef   :  { %v366_v55 = vrot.slane %v320_v54, %v365_v51  ;;  %v324_v56 = vrot.slane %v320_v54, %v323_v52  ;;  %v331_v58 = vrot.slane %v320_v54, %v330_v57  ;;  %v338_v60 = vrot.slane %v320_v54, %v337_v59 }
 0x2f0   :  { %v345_v62 = vrot.slane %v320_v54, %v344_v61  ;;  %v352_v0 = vrot.slane %v320_v54, %v351_v63  ;;  %v359_v6 = vrot.slane %v320_v54, %v358_v1  ;;  %v373_v13 = vrot.slane %v320_v54, %v372_v10 }
 0x2f1   :  { %368 = vbcast.lane.b32.xlu0 %v366_v55, 256  ;;  %326 = vbcast.lane.b32.xlu1 %v324_v56, 256 }
 0x2f5   :  { %333 = vbcast.lane.b32.xlu1 %v331_v58, 256 }
 0x2f9   :  { %340 = vbcast.lane.b32.xlu1 %v338_v60, 256 }
 0x2fd   :  { %347 = vbcast.lane.b32.xlu1 %v345_v62, 256 }
 0x301   :  { %354 = vbcast.lane.b32.xlu1 %v352_v0, 256 }
 0x305   :  { %361 = vbcast.lane.b32.xlu1 %v359_v6, 256 }
 0x309   :  { %375 = vbcast.lane.b32.xlu1 %v373_v13, 256 }
 0x363   :  { %v327_v14 = vpop.permute.xlu1 %326  ;;  %v369_v18 = vpop.permute.xlu0 %368 }
 0x364   :  { %v377_v15 = vmul.f32 %v327_v14, %v689_v3  ;;  %v383_v2 = vmul.f32 %v369_v18, %v705_v11 }
 0x366   :  { %v385_v19 = vsel %vm101_vm0, %v377_v15, 0.0 }
 0x367   :  { %v334_v16 = vpop.permute.xlu1 %333  ;;  %v386_v24 = vrot.slane %v385_v19, 4 }
 0x368   :  { %v378_v17 = vmul.f32 %v334_v16, %v691_v4  ;;  %v427_v4 = vsel %vm101_vm0, %v383_v2, 0.0 }
 0x369   :  { %v387_v29 = vadd.f32 %v386_v24, %v385_v19 }
 0x36a   :  { %v392_v20 = vsel %vm101_vm0, %v378_v17, 0.0 }
 0x36b   :  { %v393_v21 = vrot.slane %v392_v20, 4  ;;  %v341_v22 = vpop.permute.xlu1 %340  ;;  %v388_v36 = vrot.slane %v387_v29, 2 }
 0x36c   :  { %v379_v23 = vmul.f32 %v341_v22, %v699_v8  ;;  %v428_v8 = vrot.slane %v427_v4, 4 }
 0x36d   :  { %v394_v26 = vadd.f32 %v393_v21, %v392_v20  ;;  %v389_v45 = vadd.f32 %v388_v36, %v387_v29 }
 0x36e   :  { %v399_v25 = vsel %vm101_vm0, %v379_v23, 0.0  ;;  %v429_v42 = vadd.f32 %v428_v8, %v427_v4 }
 0x36f   :  { %v400_v27 = vrot.slane %v399_v25, 4  ;;  %v348_v3 = vpop.permute.xlu1 %347  ;;  %v395_v32 = vrot.slane %v394_v26, 2  ;;  %v390_v55 = vrot.slane %v389_v45, 1 }
 0x370   :  { %v380_v28 = vmul.f32 %v348_v3, %v701_v9  ;;  %v430_v52 = vrot.slane %v429_v42, 2 }
 0x371   :  { %v401_v30 = vadd.f32 %v400_v27, %v399_v25  ;;  %v396_v39 = vadd.f32 %v395_v32, %v394_v26  ;;  %v391_v1 = vadd.f32 %v390_v55, %v389_v45 }
 0x372   :  { %v406_v31 = vsel %vm101_vm0, %v380_v28, 0.0  ;;  %v431_v63 = vadd.f32 %v430_v52, %v429_v42 }
 0x373   :  { %v407_v33 = vrot.slane %v406_v31, 4  ;;  %v355_v34 = vpop.permute.xlu1 %354  ;;  %v402_v35 = vrot.slane %v401_v30, 2  ;;  %v397_v49 = vrot.slane %v396_v39, 1 }
 0x374   :  { %v381_v11 = vmul.f32 %v355_v34, %v693_v5  ;;  %v432_v17 = vrot.slane %v431_v63, 1 }
 0x375   :  { %v408_v37 = vadd.f32 %v407_v33, %v406_v31  ;;  %v403_v43 = vadd.f32 %v402_v35, %v401_v30 }
 0x376   :  { %v413_v38 = vsel %vm101_vm0, %v381_v11, 0.0  ;;  %v433_v24 = vadd.f32 %v432_v17, %v431_v63 }
 0x377   :  { %v409_v40 = vrot.slane %v408_v37, 2  ;;  %v414_v9 = vrot.slane %v413_v38, 4  ;;  %v362_v41 = vpop.permute.xlu1 %361  ;;  %v404_v53 = vrot.slane %v403_v43, 1 }
 0x378   :  { %v382_v44 = vmul.f32 %v362_v41, %v697_v7  ;;  %v398_v7 = vadd.f32 %v397_v49, %v396_v39 }
 0x379   :  { %v410_v46 = vadd.f32 %v409_v40, %v408_v37  ;;  %v415_v47 = vadd.f32 %v414_v9, %v413_v38  ;;  %v405_v0 = vadd.f32 %v404_v53, %v403_v43 }
 0x37a   :  { %v420_v48 = vsel %vm101_vm0, %v382_v44, 0.0  ;;  %v457_v15 = vsel %vm288_vm1, %v398_v7, %v391_v1 }
 0x37b   :  { %v416_v50 = vrot.slane %v415_v47, 2  ;;  %v421_v5 = vrot.slane %v420_v48, 4  ;;  %v376_v51 = vpop.permute.xlu1 %375  ;;  %v411_v56 = vrot.slane %v410_v46, 1  ;;  %v458_v18 = vsel %vm290_vm2, %v405_v0, %v457_v15 }
 0x37c   :  { %v384_v54 = vmul.f32 %v376_v51, %v707_v12 }
 0x37d   :  { %v417_v57 = vadd.f32 %v416_v50, %v415_v47  ;;  %v422_v58 = vadd.f32 %v421_v5, %v420_v48  ;;  %v412_v6 = vadd.f32 %v411_v56, %v410_v46 }
 0x37e   :  { %v434_v59 = vsel %vm101_vm0, %v384_v54, 0.0 }
 0x37f   :  { %v418_v60 = vrot.slane %v417_v57, 1  ;;  %v423_v61 = vrot.slane %v422_v58, 2  ;;  %v435_v62 = vrot.slane %v434_v59, 4  ;;  %v459_v19 = vsel %vm292_vm3, %v412_v6, %v458_v18 }
 0x381   :  { %v424_v10 = vadd.f32 %v423_v61, %v422_v58  ;;  %v436_v13 = vadd.f32 %v435_v62, %v434_v59  ;;  %v419_v14 = vadd.f32 %v418_v60, %v417_v57 }
 0x383   :  { %v425_v12 = vrot.slane %v424_v10, 1  ;;  %v437_v16 = vrot.slane %v436_v13, 2  ;;  %v460_v22 = vsel %vm294_vm4, %v419_v14, %v459_v19 }
 0x385   :  { %v426_v20 = vadd.f32 %v425_v12, %v424_v10  ;;  %v438_v21 = vadd.f32 %v437_v16, %v436_v13 }
 0x387   :  { %v439_v23 = vrot.slane %v438_v21, 1  ;;  %v461_v2 = vsel %vm296_vm5, %v426_v20, %v460_v22 }
 0x388   :  { %v462_v26 = vsel %vm298_vm6, %v433_v24, %v461_v2 }
 0x389   :  { %v440_v25 = vadd.f32 %v439_v23, %v438_v21 }
 0x38b   :  { %v463_v27 = vsel %vm300_vm7, %v440_v25, %v462_v26 }
 0x38c   :  { %465 = vst.msk [vmem:[#allocation9] sm:$0xff] %vm101_vm0, %v463_v27 }
 0x38d   :  { %617 = shalt.err (!%p614_p5)
}
 0x38e   :  { %475 = dma.vmem_to_hbm [thread:$0]  %s473_s17, 128, %s784_s6, [#allocation5]  }
 0x38f   :  { %630 = dma.done.wait [#allocation5], 128  }
 0x390   :  { %631 = vsyncadd [#allocation5], 4294967168 }
 0x391   :  { %479 = vsyncpa [#allocation4], 1 }
 0x392   :  { %480 = vsyncpa [#allocation7], 1 }
 0x393   :  { %481 = vsyncpa [#allocation5], 1 }

</bundles_post_ra>
